<compile_context>
chip_gen: v6e
topology: v6e:2x2x1
jax: 0.10.0
libtpu: 0.0.40
codegen_flags: <defaults>
</compile_context>

<pallas_src>
from functools import partial

import numpy as np
import jax
import jax.numpy as jnp
from jax.experimental import pallas as pl
from jax.experimental.pallas import tpu as pltpu


def _device_kind() -> str:
    try:
        return jax.devices()[0].device_kind.lower()
    except Exception:
        return ""


def _is_pre_v6_device() -> bool:
    # v2/v3/v4/v5 lack bf16 VALUs -> cast bf16 logits to f32 in-kernel there.
    kind = _device_kind()
    return any(tag in kind for tag in ("v2", "v3", "v4", "v5"))


def _accuracy_tile_kernel(logits_ref, y_true_ref, correct_ref, total_ref, *,
                          n_valid, tiles_per_split, compute_dtype):
    """One batch tile, accumulating into resident (8, C) int32 count blocks.

    logits_ref : [T, C]  wire dtype (bf16/f32)
    y_true_ref : [T, 1]  int32
    correct_ref: [8, C]  int32 accumulator (row 0 holds the counts)
    total_ref  : [8, C]  int32 accumulator (row 0 holds the counts)
    """
    s = pl.program_id(0)   # split ("parallel" axis, one per TensorCore on v7x)
    i = pl.program_id(1)   # tile within split ("arbitrary" / accumulation axis)

    @pl.when(i == 0)
    def _init():
        correct_ref[...] = jnp.zeros_like(correct_ref)
        total_ref[...] = jnp.zeros_like(total_ref)

    logits = logits_ref[...]
    if logits.dtype != compute_dtype:
        logits = logits.astype(compute_dtype)   # only on pre-v6 devices for bf16
    y_true = y_true_ref[...]                    # [T, 1] int32
    t, c = logits.shape

    # Row mask from the *unclamped* global tile index: the ragged last tile's
    # out-of-range rows and any phantom tile of an uneven split contribute
    # nothing (OOB block reads may return garbage, but every contribution below
    # is gated by `valid`, so garbage never leaks into the counts).
    row0 = (s * tiles_per_split + i) * t
    row_ids = row0 + jax.lax.broadcasted_iota(jnp.int32, (t, 1), 0)
    valid = row_ids < n_valid                   # [T, 1] bool

    # argmax over classes (dim=1), first maximal index (torch.argmax semantics).
    col_ids = jax.lax.broadcasted_iota(jnp.int32, (t, c), 1)
    row_max = jnp.max(logits, axis=1, keepdims=True)
    cand = jnp.where(logits == row_max, col_ids, jnp.int32(c))
    pred = jnp.min(cand, axis=1, keepdims=True)              # [T, 1] int32

    one_hot = jnp.logical_and(valid, y_true == col_ids)          # [T, C] bool
    correct_rows = jnp.logical_and(one_hot, pred == y_true)      # [T, C] bool

    correct_part = jnp.sum(correct_rows.astype(jnp.int32), axis=0, keepdims=True)  # [1, C]
    total_part = jnp.sum(one_hot.astype(jnp.int32), axis=0, keepdims=True)         # [1, C]

    correct_ref[0:1, :] = correct_ref[0:1, :] + correct_part
    total_ref[0:1, :] = total_ref[0:1, :] + total_part


def _per_class_counts(y_true, logits, num_classes, *, max_tile_rows=None):
    """Pallas-backed per-class (correct, total) int32 counts from logits [N, C]."""
    logits = jnp.asarray(logits)
    y_true = jnp.asarray(y_true).astype(jnp.int32)
    n, c = logits.shape

    itemsize = int(logits.dtype.itemsize)
    # Sublane tile of the wire dtype: 8 rows for 4-byte, 16 for bf16, 32 for 1-byte.
    sublane = max(8, 32 // max(itemsize, 1))

    # Only tiny inputs (< one sublane tile) need padding; everything else
    # streams unpadded with in-kernel row masking (no full-array HBM copies).
    if n < sublane:
        pad = sublane - n
        logits = jnp.pad(logits, ((0, pad), (0, 0)))
        y_true = jnp.pad(y_true, ((0, pad),), constant_values=-1)
    n_rows = logits.shape[0]

    # bf16 compute is exact for max/compare; keep it native on v6e/v7x, cast
    # to f32 only on pre-v6 chips (no bf16 VPU there).
    compute_dtype = logits.dtype
    if logits.dtype != jnp.float32 and _is_pre_v6_device():
        compute_dtype = jnp.float32

    # Bytes-based tile sizing: ~40 MiB budget = double-buffered logits tile
    # (+ y_true) + ~6 [T,C] 32-bit in-kernel temporaries (conservative).
    budget = 40 * 1024 * 1024
    per_row = c * (2 * itemsize + 6 * 4) + 2 * 4
    tile_n = max(sublane, (budget // per_row) // sublane * sublane)
    if max_tile_rows is not None:          # test hook: force small tiles
        tile_n = min(tile_n, max(sublane, (max_tile_rows // sublane) * sublane))
    tile_n = min(tile_n, (n_rows // sublane) * sublane)

    num_tiles = pl.cdiv(n_rows, tile_n)
    num_splits = 2 if num_tiles >= 2 else 1          # one stream per TC on v7x
    tiles_per_split = pl.cdiv(num_tiles, num_splits)

    # Phantom tiles of an uneven split read a clamped (in-bounds) block; the
    # kernel masks them out via the unclamped row index.
    def _tile_idx(s, i):
        return jnp.minimum(s * tiles_per_split + i, num_tiles - 1)

    y2 = y_true.reshape(n_rows, 1)

    # VMEM limit from the actual footprint (<= 56 MiB: safe on v7x's 64 MiB).
    est_vmem = (2 * tile_n * c * itemsize        # logits double buffer
                + 2 * tile_n * 4                 # y_true double buffer
                + 6 * tile_n * c * 4             # in-kernel [T, C] temporaries
                + 4 * 8 * c * 4)                 # output accumulator blocks
    vmem_limit = int(min(56 * 1024 * 1024, max(est_vmem + (2 << 20), 16 * 1024 * 1024)))

    kernel = partial(_accuracy_tile_kernel, n_valid=n,
                     tiles_per_split=tiles_per_split, compute_dtype=compute_dtype)

    correct_p, total_p = pl.pallas_call(
        kernel,
        out_shape=(
            jax.ShapeDtypeStruct((num_splits, 8, c), jnp.int32),
            jax.ShapeDtypeStruct((num_splits, 8, c), jnp.int32),
        ),
        grid=(num_splits, tiles_per_split),
        in_specs=[
            pl.BlockSpec((tile_n, c), lambda s, i: (_tile_idx(s, i), 0)),
            pl.BlockSpec((tile_n, 1), lambda s, i: (_tile_idx(s, i), 0)),
        ],
        out_specs=(
            pl.BlockSpec((None, 8, c), lambda s, i: (s, 0, 0)),
            pl.BlockSpec((None, 8, c), lambda s, i: (s, 0, 0)),
        ),
        compiler_params=pltpu.CompilerParams(
            dimension_semantics=("parallel", "arbitrary"),
            vmem_limit_bytes=vmem_limit,
        ),
    )(logits, y2)

    # Tiny epilogue: sum the (<=2) per-split accumulator rows.
    correct = jnp.sum(correct_p[:, 0, :], axis=0)
    total = jnp.sum(total_p[:, 0, :], axis=0)

    if c >= num_classes:
        return correct[:num_classes], total[:num_classes]
    pad = num_classes - c
    return jnp.pad(correct, (0, pad)), jnp.pad(total, (0, pad))


def _label_counts(y_true, y_pred, num_classes):
    """Per-class counts when predictions are already class labels (no kernel needed)."""
    yt = jnp.ravel(jnp.asarray(y_true)).astype(jnp.int32)
    yp = jnp.ravel(jnp.asarray(y_pred)).astype(jnp.int32)
    class_ids = jnp.arange(num_classes, dtype=jnp.int32)
    one_hot = yt[:, None] == class_ids[None, :]
    correct = jnp.sum(jnp.logical_and(one_hot, (yp == yt)[:, None]), axis=0).astype(jnp.int32)
    total = jnp.sum(one_hot, axis=0).astype(jnp.int32)
    return correct, total


class AccuracyPallas:
    """Mirrors CollaborativeCoding.metrics.Accuracy.

    The per-batch argmax + per-class reductions run in a Pallas TPU kernel at
    forward() time and exact int32 (correct, total) vectors are accumulated,
    instead of storing raw logits and concatenating at metric time (saves a
    full extra HBM pass over every logit tensor)."""

    def __init__(self, num_classes, macro_averaging=False):
        self.num_classes = num_classes
        self.macro_averaging = macro_averaging
        self.__reset__()

    def forward(self, y_true, y_pred):
        y_true = jnp.asarray(y_true)
        y_pred = jnp.asarray(y_pred)
        if y_pred.ndim > 1:
            correct, total = _per_class_counts(y_true, y_pred, self.num_classes)
        else:
            correct, total = _label_counts(y_true, y_pred, self.num_classes)
        self._correct = self._correct + correct
        self._total = self._total + total
        self._n_batches += 1

    def __returnmetric__(self):
        if self._n_batches == 0:
            return np.nan
        correct = self._correct.astype(jnp.float32)
        total = self._total.astype(jnp.float32)
        if self.macro_averaging:
            present = total > 0
            n_present = jnp.sum(present.astype(jnp.float32))
            per_class = jnp.where(present, correct / jnp.maximum(total, 1.0), 0.0)
            macro = jnp.where(
                n_present > 0,
                jnp.sum(per_class) / jnp.maximum(n_present, 1.0),
                jnp.float32(jnp.nan),
            )
            return float(macro)
        return float(jnp.sum(correct) / jnp.maximum(jnp.sum(total), 1.0))

    def __reset__(self):
        self._correct = jnp.zeros((self.num_classes,), jnp.int32)
        self._total = jnp.zeros((self.num_classes,), jnp.int32)
        self._n_batches = 0
        return None


if __name__ == "__main__":
    key = jax.random.PRNGKey(0)

    def reference(y_true, logits):
        pred = np.asarray(jnp.argmax(logits, axis=1))
        yt = np.asarray(y_true)
        micro = float(np.mean(pred == yt))
        accs = [float(np.mean(pred[yt == cls] == cls)) for cls in np.unique(yt)]
        macro = float(np.mean(accs))
        return micro, macro

    def run_case(case_key, batch, num_classes, dtype):
        k1, k2 = jax.random.split(case_key)
        logits = jax.random.normal(k1, (batch, num_classes), dtype=jnp.float32).astype(dtype)
        y_true = jax.random.randint(k2, (batch,), 0, num_classes, dtype=jnp.int32)

        micro_m = AccuracyPallas(num_classes, macro_averaging=False)
        micro_m.forward(y_true, logits)
        macro_m = AccuracyPallas(num_classes, macro_averaging=True)
        macro_m.forward(y_true, logits)

        micro = micro_m.__returnmetric__()
        macro = macro_m.__returnmetric__()
        micro_ref, macro_ref = reference(y_true, logits)
        assert abs(micro - micro_ref) < 1e-6, (batch, num_classes, str(dtype), micro, micro_ref)
        assert abs(macro - macro_ref) < 1e-6, (batch, num_classes, str(dtype), macro, macro_ref)

    # Main small case: run the kernel once explicitly and block on the result.
    k1, k2, k3, k4 = jax.random.split(key, 4)
    batch, num_classes = 16, 10
    logits = jax.random.normal(k1, (batch, num_classes), dtype=jnp.float32)
    y_true = jax.random.randint(k2, (batch,), 0, num_classes, dtype=jnp.int32)
    correct, total = _per_class_counts(y_true, logits, num_classes)
    jax.block_until_ready((correct, total))

    # Full metric path (micro + macro) across a few shapes / dtypes:
    run_case(k3, 16, 10, jnp.float32)                          # aligned batch, f32
    run_case(k4, 20, 10, jnp.bfloat16)                         # ragged last tile, bf16 on the wire
    run_case(jax.random.fold_in(key, 7), 5, 10, jnp.float32)   # tiny batch (< one sublane tile)

    # Multi-tile accumulator path with forced small tiles: exercises the
    # 2-way "parallel" split, the resident-accumulator init/add, a ragged
    # last tile and a clamped phantom tile of the uneven split.
    ka, kb = jax.random.split(jax.random.fold_in(key, 11))
    logits_m = jax.random.normal(ka, (50, 10), dtype=jnp.float32)
    y_true_m = jax.random.randint(kb, (50,), 0, 10, dtype=jnp.int32)
    c_m, t_m = _per_class_counts(y_true_m, logits_m, 10, max_tile_rows=8)
    pred_np = np.asarray(jnp.argmax(logits_m, axis=1))
    yt_np = np.asarray(y_true_m)
    c_ref = np.array([np.sum((pred_np == cls) & (yt_np == cls)) for cls in range(10)])
    t_ref = np.array([np.sum(yt_np == cls) for cls in range(10)])
    assert np.array_equal(np.asarray(c_m), c_ref), (np.asarray(c_m), c_ref)
    assert np.array_equal(np.asarray(t_m), t_ref), (np.asarray(t_m), t_ref)

    # Incremental accumulation across multiple forward() batches.
    kc, kd, ke, kf = jax.random.split(jax.random.fold_in(key, 13), 4)
    lg1 = jax.random.normal(kc, (24, 10), dtype=jnp.float32)
    yt1 = jax.random.randint(kd, (24,), 0, 10, dtype=jnp.int32)
    lg2 = jax.random.normal(ke, (17, 10), dtype=jnp.float32)
    yt2 = jax.random.randint(kf, (17,), 0, 10, dtype=jnp.int32)
    m = AccuracyPallas(10, macro_averaging=False)
    m.forward(yt1, lg1)
    m.forward(yt2, lg2)
    micro_acc = m.__returnmetric__()
    micro_ref, _ = reference(np.concatenate([np.asarray(yt1), np.asarray(yt2)]),
                             jnp.concatenate([lg1, lg2], axis=0))
    assert abs(micro_acc - micro_ref) < 1e-6, (micro_acc, micro_ref)

    print("KERNEL_OK")
</pallas_src>

<mosaic_0001>
module attributes {stable_mosaic.version = 11 : i64} {
  func.func @_accuracy_tile_kernel(%arg0: i32, %arg1: i32, %arg2: memref<16x10xf32, #tpu.memory_space<vmem>>, %arg3: memref<16x1xi32, #tpu.memory_space<vmem>>, %arg4: memref<1x8x10xi32, #tpu.memory_space<vmem>>, %arg5: memref<1x8x10xi32, #tpu.memory_space<vmem>>) attributes {dimension_semantics = [#tpu.dimension_semantics<parallel>, #tpu.dimension_semantics<arbitrary>], iteration_bounds = array<i64: 1, 1>, scalar_prefetch = 0 : i64, scratch_operands = 0 : i64, tpu.core_type = #tpu.core_type<tc>, window_params = [{transform_indices = @transform_0, window_bounds = array<i64: 16, 10>}, {transform_indices = @transform_1, window_bounds = array<i64: 16, 1>}, {transform_indices = @transform_2, window_bounds = array<i64: 1, 8, 10>}, {transform_indices = @transform_3, window_bounds = array<i64: 1, 8, 10>}]} {
    %c0_i32 = arith.constant 0 : i32
    %0 = arith.cmpi eq, %arg1, %c0_i32 : i32
    %1 = arith.extui %0 : i1 to i32
    %c0_i32_0 = arith.constant 0 : i32
    %2 = arith.cmpi ne, %1, %c0_i32_0 : i32
    scf.if %2 {
      %c0_i32_20 = arith.constant 0 : i32
      %47 = vector.broadcast %c0_i32_20 : i32 to vector<8x10xi32>
      %c0_21 = arith.constant 0 : index
      %c0_22 = arith.constant 0 : index
      %c0_23 = arith.constant 0 : index
      %48 = vector.load %arg4[%c0_21, %c0_22, %c0_23] : memref<1x8x10xi32, #tpu.memory_space<vmem>>, vector<1x8x10xi32>
      %49 = vector.shape_cast %48 : vector<1x8x10xi32> to vector<8x10xi32>
      %50 = vector.shape_cast %47 : vector<8x10xi32> to vector<1x8x10xi32>
      tpu.vector_store %arg4[%c0_21, %c0_22, %c0_23], %50 {strides = array<i32>} : memref<1x8x10xi32, #tpu.memory_space<vmem>>, vector<1x8x10xi32>,
      %c0_i32_24 = arith.constant 0 : i32
      %51 = vector.broadcast %c0_i32_24 : i32 to vector<8x10xi32>
      %c0_25 = arith.constant 0 : index
      %c0_26 = arith.constant 0 : index
      %c0_27 = arith.constant 0 : index
      %52 = vector.load %arg5[%c0_25, %c0_26, %c0_27] : memref<1x8x10xi32, #tpu.memory_space<vmem>>, vector<1x8x10xi32>
      %53 = vector.shape_cast %52 : vector<1x8x10xi32> to vector<8x10xi32>
      %54 = vector.shape_cast %51 : vector<8x10xi32> to vector<1x8x10xi32>
      tpu.vector_store %arg5[%c0_25, %c0_26, %c0_27], %54 {strides = array<i32>} : memref<1x8x10xi32, #tpu.memory_space<vmem>>, vector<1x8x10xi32>,
    } else {
    }
    %c0 = arith.constant 0 : index
    %c0_1 = arith.constant 0 : index
    %3 = vector.load %arg2[%c0, %c0_1] : memref<16x10xf32, #tpu.memory_space<vmem>>, vector<16x10xf32>
    %c0_2 = arith.constant 0 : index
    %c0_3 = arith.constant 0 : index
    %4 = vector.load %arg3[%c0_2, %c0_3] : memref<16x1xi32, #tpu.memory_space<vmem>>, vector<16x1xi32>
    %c1_i32 = arith.constant 1 : i32
    %5 = arith.muli %arg0, %c1_i32 : i32
    %6 = arith.addi %5, %arg1 : i32
    %c16_i32 = arith.constant 16 : i32
    %7 = arith.muli %6, %c16_i32 : i32
    %8 = tpu.iota {dimensions = array<i32: 0>} : vector<16x1xi32>
    %9 = vector.broadcast %7 : i32 to vector<16x1xi32>
    %10 = arith.addi %9, %8 : vector<16x1xi32>
    %c16_i32_4 = arith.constant 16 : i32
    %11 = vector.broadcast %c16_i32_4 : i32 to vector<16x1xi32>
    %12 = arith.cmpi slt, %10, %11 : vector<16x1xi32>
    %13 = tpu.iota {dimensions = array<i32: 1>} : vector<16x10xi32>
    %cst = arith.constant dense<0xFF800000> : vector<16xf32>
    %14 = vector.multi_reduction <maximumf>, %3, %cst [1] : vector<16x10xf32> to vector<16xf32>
    %15 = vector.shape_cast %14 : vector<16xf32> to vector<16x1xf32>
    %16 = vector.broadcast %15 : vector<16x1xf32> to vector<16x10xf32>
    %17 = arith.cmpf oeq, %3, %16 : vector<16x10xf32>
    %c10_i32 = arith.constant 10 : i32
    %18 = vector.broadcast %c10_i32 : i32 to vector<16x10xi32>
    %19 = arith.select %17, %13, %18 : vector<16x10xi1>, vector<16x10xi32>
    %cst_5 = arith.constant dense<2147483647> : vector<16xi32>
    %20 = vector.multi_reduction <minsi>, %19, %cst_5 [1] : vector<16x10xi32> to vector<16xi32>
    %21 = vector.shape_cast %20 : vector<16xi32> to vector<16x1xi32>
    %22 = vector.broadcast %4 : vector<16x1xi32> to vector<16x10xi32>
    %23 = arith.cmpi eq, %22, %13 : vector<16x10xi32>
    %24 = vector.broadcast %12 : vector<16x1xi1> to vector<16x10xi1>
    %25 = arith.andi %24, %23 : vector<16x10xi1>
    %26 = arith.cmpi eq, %21, %4 : vector<16x1xi32>
    %27 = vector.broadcast %26 : vector<16x1xi1> to vector<16x10xi1>
    %28 = arith.andi %25, %27 : vector<16x10xi1>
    %29 = arith.extui %28 : vector<16x10xi1> to vector<16x10xi32>
    %cst_6 = arith.constant dense<0> : vector<10xi32>
    %30 = vector.multi_reduction <add>, %29, %cst_6 [0] : vector<16x10xi32> to vector<10xi32>
    %31 = vector.shape_cast %30 : vector<10xi32> to vector<1x10xi32>
    %32 = arith.extui %25 : vector<16x10xi1> to vector<16x10xi32>
    %cst_7 = arith.constant dense<0> : vector<10xi32>
    %33 = vector.multi_reduction <add>, %32, %cst_7 [0] : vector<16x10xi32> to vector<10xi32>
    %34 = vector.shape_cast %33 : vector<10xi32> to vector<1x10xi32>
    %c0_8 = arith.constant 0 : index
    %c0_9 = arith.constant 0 : index
    %c0_10 = arith.constant 0 : index
    %35 = vector.load %arg4[%c0_8, %c0_9, %c0_10] : memref<1x8x10xi32, #tpu.memory_space<vmem>>, vector<1x1x10xi32>
    %36 = vector.shape_cast %35 : vector<1x1x10xi32> to vector<1x10xi32>
    %37 = arith.addi %36, %31 : vector<1x10xi32>
    %c0_11 = arith.constant 0 : index
    %c0_12 = arith.constant 0 : index
    %c0_13 = arith.constant 0 : index
    %38 = vector.load %arg4[%c0_11, %c0_12, %c0_13] : memref<1x8x10xi32, #tpu.memory_space<vmem>>, vector<1x1x10xi32>
    %39 = vector.shape_cast %38 : vector<1x1x10xi32> to vector<1x10xi32>
    %40 = vector.shape_cast %37 : vector<1x10xi32> to vector<1x1x10xi32>
    tpu.vector_store %arg4[%c0_11, %c0_12, %c0_13], %40 {strides = array<i32>} : memref<1x8x10xi32, #tpu.memory_space<vmem>>, vector<1x1x10xi32>,
    %c0_14 = arith.constant 0 : index
    %c0_15 = arith.constant 0 : index
    %c0_16 = arith.constant 0 : index
    %41 = vector.load %arg5[%c0_14, %c0_15, %c0_16] : memref<1x8x10xi32, #tpu.memory_space<vmem>>, vector<1x1x10xi32>
    %42 = vector.shape_cast %41 : vector<1x1x10xi32> to vector<1x10xi32>
    %43 = arith.addi %42, %34 : vector<1x10xi32>
    %c0_17 = arith.constant 0 : index
    %c0_18 = arith.constant 0 : index
    %c0_19 = arith.constant 0 : index
    %44 = vector.load %arg5[%c0_17, %c0_18, %c0_19] : memref<1x8x10xi32, #tpu.memory_space<vmem>>, vector<1x1x10xi32>
    %45 = vector.shape_cast %44 : vector<1x1x10xi32> to vector<1x10xi32>
    %46 = vector.shape_cast %43 : vector<1x10xi32> to vector<1x1x10xi32>
    tpu.vector_store %arg5[%c0_17, %c0_18, %c0_19], %46 {strides = array<i32>} : memref<1x8x10xi32, #tpu.memory_space<vmem>>, vector<1x1x10xi32>,
    return
  }
  func.func @transform_0(%arg0: i32, %arg1: i32) -> (i32, i32) {
    %c1_i32 = arith.constant 1 : i32
    %0 = arith.muli %arg0, %c1_i32 : i32
    %1 = arith.addi %0, %arg1 : i32
    %c0_i32 = arith.constant 0 : i32
    %2 = arith.minsi %1, %c0_i32 : i32
    %c0_i32_0 = arith.constant 0 : i32
    %c0_i32_1 = arith.constant 0 : i32
    return %2, %c0_i32_0 : i32, i32
  }
  func.func @transform_1(%arg0: i32, %arg1: i32) -> (i32, i32) {
    %c1_i32 = arith.constant 1 : i32
    %0 = arith.muli %arg0, %c1_i32 : i32
    %1 = arith.addi %0, %arg1 : i32
    %c0_i32 = arith.constant 0 : i32
    %2 = arith.minsi %1, %c0_i32 : i32
    %c0_i32_0 = arith.constant 0 : i32
    %c0_i32_1 = arith.constant 0 : i32
    return %2, %c0_i32_0 : i32, i32
  }
  func.func @transform_2(%arg0: i32, %arg1: i32) -> (i32, i32, i32) {
    %c0_i32 = arith.constant 0 : i32
    %c0_i32_0 = arith.constant 0 : i32
    %c0_i32_1 = arith.constant 0 : i32
    return %arg0, %c0_i32, %c0_i32_0 : i32, i32, i32
  }
  func.func @transform_3(%arg0: i32, %arg1: i32) -> (i32, i32, i32) {
    %c0_i32 = arith.constant 0 : i32
    %c0_i32_0 = arith.constant 0 : i32
    %c0_i32_1 = arith.constant 0 : i32
    return %arg0, %c0_i32, %c0_i32_0 : i32, i32, i32
  }
}

</mosaic_0001>

<bundles_post_ra>
// kernel: tpu_custom_call.1
= control target key start
LH: loop header
LB: loop body
LE: loop exit
PB: predicated region body
PF: predicated region fallthrough
CT: control target
= control target key end

     0   :  { %9 = vsyncpa [#allocation3], 0  ;;  %vm83_vm0 = vcmask 80896   ;;  %s366_s0 = inlined_call_operand.vmem [shape: f32[16,10], index: 0, kind: input, shape index: {}]   ;;  %s367_s1 = inlined_call_operand.vmem [shape: s32[16,1], index: 1, kind: input, shape index: {}]   ;;  %s368_s2 = inlined_call_operand.hbm [shape: s32[1,8,10], index: 2, kind: output, shape index: {0}]   ;;  %s369_s3 = inlined_call_operand.hbm [shape: s32[1,8,10], index: 3, kind: output, shape index: {1}]  }
   0x1   :  { %v86_v0 = vld [vmem:[%s366_s0] sm:$0xff]  ;;  %v87_v1 = vld [vmem:[%s366_s0 + $0x8] sm:$0xff] }
   0x2   :  { %10 = vsyncpa [#allocation5], 0  ;;  %v103_v2 = vsel %vm83_vm0, %v86_v0, -inf  ;;  %v106_v3 = vsel %vm83_vm0, %v87_v1, -inf  ;;  %v100_v4 = vlaneseq  ;;  %v289_v16 = vmov 0   ;;  %v89_v25 = vld [vmem:[%s367_s1 + $0x8] sm:$0xff] }
   0x3   :  { %104 = vmax.xlane.f32.xlu0 %v103_v2  ;;  %244 = vset.pattern.permute.xlu1 %v289_v16  ;;  %84 = vst.msk [vmem:[#allocation2] sm:$0xff] %vm83_vm0, %v289_v16  ;;  %85 = vst.msk [vmem:[#allocation4] sm:$0xff] %vm83_vm0, %v289_v16  ;;  %v88_v26 = vld [vmem:[%s367_s1] sm:$0xff]  ;;  %vm195_vm9 = vcmask 73728   ;;  %s290_s1 = smov [#allocation4]  }
   0x4   :  { %v320_v5 = vand.u32 127, %v100_v4  ;;  %243 = vset.pattern.permute.xlu0 %v289_v16  ;;  %s216_s19 = sshll.u32 %s290_s1, 4  ;;  %s217_s19 = int_to_ptr.vmem [resolvable:$true] %s216_s19 }
   0x5   :  { %s245_s20 = scalar_lea.vmem %s217_s19, 128  ;;  %p250_p1 = scmp.lt.s32.totalorder %s217_s19, %s217_s19 }
   0x6   :  { %p246_p0 = scmp.ne.s32.totalorder %s217_s19, %s245_s20  ;;  %p251_p2 = scmp.lt.s32.totalorder %s245_s20, %s245_s20 }
   0x7   :  { %107 = vmax.xlane.f32.xlu0 %v106_v3 }
   0x8   :  { %p252_p3 = por %p251_p2, %p250_p1 }
   0xa   :  { %v197_v51 = vld [vmem:[#allocation4] sm:$0x1]  ;;  %p253_p4 = pnand %p252_p3, %p246_p0 }
  0x8c   :  { %v105_v6 = vpop.xlane.xlu0 %104 }
  0x8d   :  { %vm109_vm1 = vcmp.eq.f32.partialorder %v86_v0, %v105_v6 }
  0x8e   :  { %v111_v7 = vsel %vm109_vm1, %v320_v5, 10 }
  0x8f   :  { %v113_v8 = vsel %vm83_vm0, %v111_v7, 2147483647 }
  0x90   :  { %v108_v9 = vpop.xlane.xlu0 %107  ;;  %v115_v10 = vshra.s32 %v113_v8, 16  ;;  %v114_v17 = vand.u32 65535, %v113_v8 }
  0x91   :  { %vm110_vm2 = vcmp.eq.f32.partialorder %v87_v1, %v108_v9 }
  0x92   :  { %v112_v11 = vsel %vm110_vm2, %v320_v5, 10  ;;  %v117_v12 = vcvt.s32.f32 %v115_v10  ;;  %v116_v19 = vcvt.s32.f32 %v114_v17 }
  0x93   :  { %v128_v13 = vsel %vm83_vm0, %v112_v11, 2147483647 }
  0x94   :  { %118 = vmin.xlane.f32.xlu1 %v117_v12  ;;  %v130_v14 = vshra.s32 %v128_v13, 16  ;;  %v129_v20 = vand.u32 65535, %v128_v13 }
  0x96   :  { %v132_v15 = vcvt.s32.f32 %v130_v14  ;;  %v131_v23 = vcvt.s32.f32 %v129_v20 }
  0x98   :  { %133 = vmin.xlane.f32.xlu1 %v132_v15 }
 0x11d   :  { %v119_v18 = vpop.xlane.xlu1 %118 }
 0x11e   :  { %vm120_vm3 = vcmp.eq.f32.partialorder %v117_v12, %v119_v18  ;;  %v125_v27 = vcvt.f32.s32 %v119_v18 }
 0x11f   :  { %v121_v21 = vsel %vm120_vm3, %v116_v19, inf }
 0x120   :  { %122 = vmin.xlane.f32.xlu0 %v121_v21  ;;  %v126_v29 = vshll.u32 %v125_v27, 16 }
 0x121   :  { %v134_v22 = vpop.xlane.xlu1 %133 }
 0x122   :  { %vm135_vm4 = vcmp.eq.f32.partialorder %v132_v15, %v134_v22  ;;  %v140_v30 = vcvt.f32.s32 %v134_v22 }
 0x123   :  { %v136_v24 = vsel %vm135_vm4, %v131_v23, inf }
 0x124   :  { %137 = vmin.xlane.f32.xlu1 %v136_v24  ;;  %v141_v34 = vshll.u32 %v140_v30, 16 }
 0x135   :  { %147 = vperm.xlu1 %244, %v89_v25  }
 0x136   :  { %144 = vperm.xlu0 %243, %v88_v26  }
 0x1a9   :  { %v123_v28 = vpop.xlane.xlu0 %122 }
 0x1aa   :  { %v124_v31 = vcvt.f32.s32 %v123_v28 }
 0x1ac   :  { %v127_v32 = vadd.s32 %v126_v29, %v124_v31 }
 0x1ad   :  { %v138_v33 = vpop.xlane.xlu1 %137 }
 0x1ae   :  { %v139_v35 = vcvt.f32.s32 %v138_v33  ;;  %vm157_vm5 = vcmp.eq.s32.totalorder %v127_v32, %v88_v26 }
 0x1af   :  { %v159_v36 = vsel %vm157_vm5, 1, %v289_v16 }
 0x1b0   :  { %v142_v37 = vadd.s32 %v141_v34, %v139_v35  ;;  %162 = vperm.xlu1 %244, %v159_v36  }
 0x1b1   :  { %v148_v38 = vpop.permute.xlu1 %147  ;;  %v145_v39 = vpop.permute.xlu0 %144 }
 0x1b2   :  { %vm158_vm6 = vcmp.eq.s32.totalorder %v142_v37, %v89_v25  ;;  %vm150_vm7 = vcmp.eq.s32.totalorder %v148_v38, %v320_v5  ;;  %vm149_vm8 = vcmp.eq.s32.totalorder %v145_v39, %v320_v5 }
 0x1b3   :  { %v160_v40 = vsel %vm158_vm6, 1, %v289_v16  ;;  %v183_v41 = vsel %vm150_vm7, 1, %v289_v16  ;;  %v182_v42 = vsel %vm149_vm8, 1, %v289_v16 }
 0x1b4   :  { %165 = vperm.xlu1 %244, %v160_v40   ;;  %v185_v43 = vsel %vm83_vm0, %v183_v41, 0  ;;  %v184_v44 = vsel %vm83_vm0, %v182_v42, 0 }
 0x1b5   :  { %v186_v45 = vadd.s32 %v185_v43, %v184_v44 }
 0x1b7   :  { %v187_v46 = vrot.slane %v186_v45, 4 }
 0x1b9   :  { %v188_v47 = vadd.s32 %v187_v46, %v186_v45 }
 0x1bb   :  { %v189_v48 = vrot.slane %v188_v47, 2 }
 0x1bd   :  { %v190_v49 = vadd.s32 %v189_v48, %v188_v47 }
 0x1bf   :  { %v191_v50 = vrot.slane %v190_v49, 1 }
 0x1c1   :  { %v192_v52 = vadd.s32 %v191_v50, %v190_v49 }
 0x1c3   :  { %v198_v53 = vadd.s32 %v197_v51, %v192_v52 }
 0x1c5   :  { %199 = vst.msk [vmem:[#allocation4] sm:$0x1] %vm195_vm9, %v198_v53 }
 0x1c6   :  { %256 = shalt.err (!%p253_p4)
}
 0x1c7   :  { %219 = dma.vmem_to_hbm [thread:$0]  %s217_s19, 128, %s369_s3, [#allocation5]   ;;  %v193_v2 = vld [vmem:[#allocation2] sm:$0x1] }
 0x1c8   :  { %s291_s3 = smov [#allocation2]  }
 0x1c9   :  { %s206_s23 = sshll.u32 %s291_s3, 4  ;;  %s207_s23 = int_to_ptr.vmem [resolvable:$true] %s206_s23 }
 0x1ca   :  { %s265_s24 = scalar_lea.vmem %s207_s23, 128  ;;  %p270_p6 = scmp.lt.s32.totalorder %s207_s23, %s207_s23 }
 0x1cb   :  { %p266_p5 = scmp.ne.s32.totalorder %s207_s23, %s265_s24  ;;  %p271_p7 = scmp.lt.s32.totalorder %s265_s24, %s265_s24 }
 0x1cd   :  { %p272_p8 = por %p271_p7, %p270_p6 }
 0x1cf   :  { %p273_p9 = pnand %p272_p8, %p266_p5 }
 0x22b   :  { %v163_v54 = vpop.permute.xlu1 %162 }
 0x22c   :  { %vm167_vm10 = vcmp.eq.s32.totalorder %v163_v54, 1 }
 0x22d   :  { %vm169_vm11 = vmand %vm149_vm8, %vm167_vm10 }
 0x22e   :  { %v171_v56 = vsel %vm169_vm11, 1, %v289_v16 }
 0x22f   :  { %v166_v55 = vpop.permute.xlu1 %165  ;;  %v173_v58 = vsel %vm83_vm0, %v171_v56, 0 }
 0x230   :  { %vm168_vm12 = vcmp.eq.s32.totalorder %v166_v55, 1 }
 0x231   :  { %vm170_vm13 = vmand %vm150_vm7, %vm168_vm12 }
 0x232   :  { %v172_v57 = vsel %vm170_vm13, 1, %v289_v16 }
 0x233   :  { %v174_v59 = vsel %vm83_vm0, %v172_v57, 0 }
 0x234   :  { %v175_v60 = vadd.s32 %v174_v59, %v173_v58 }
 0x236   :  { %v176_v61 = vrot.slane %v175_v60, 4 }
 0x238   :  { %v177_v62 = vadd.s32 %v176_v61, %v175_v60 }
 0x23a   :  { %v178_v63 = vrot.slane %v177_v62, 2 }
 0x23c   :  { %v179_v0 = vadd.s32 %v178_v63, %v177_v62 }
 0x23e   :  { %v180_v1 = vrot.slane %v179_v0, 1 }
 0x240   :  { %v181_v3 = vadd.s32 %v180_v1, %v179_v0 }
 0x242   :  { %v194_v4 = vadd.s32 %v193_v2, %v181_v3 }
 0x244   :  { %196 = vst.msk [vmem:[#allocation2] sm:$0x1] %vm195_vm9, %v194_v4 }
 0x245   :  { %276 = shalt.err (!%p273_p9)
}
 0x246   :  { %209 = dma.vmem_to_hbm [thread:$0]  %s207_s23, 128, %s368_s2, [#allocation3]  }
 0x247   :  { %285 = dma.done.wait [#allocation3], 128  }
 0x248   :  { %286 = vsyncadd [#allocation3], 4294967168 }
 0x249   :  { %287 = dma.done.wait [#allocation5], 128  }
 0x24a   :  { %288 = vsyncadd [#allocation5], 4294967168 }
 0x24b   :  { %226 = vsyncpa [#allocation3], 1 }
 0x24c   :  { %227 = vsyncpa [#allocation5], 1 }

</bundles_post_ra>
